<compile_context>
chip_gen: v6e
topology: v6e:2x2x1
jax: 0.10.0
libtpu: 0.0.40
codegen_flags: <defaults>
</compile_context>

<pallas_src>
import jax
import jax.numpy as jnp
from jax.experimental import pallas as pl
from jax.experimental.pallas import tpu as pltpu


# --------------------------------------------------------------------------
# helpers
# --------------------------------------------------------------------------
def _largest_aligned_divisor(n, target, align):
    """Largest divisor of n that is a multiple of `align` and <= target.
    Falls back to n itself (full extent is always a legal block)."""
    best = None
    upper = min(n, target)
    for cand in range(align, upper + 1, align):
        if n % cand == 0:
            best = cand
    return best if best is not None else n


def _device_vmem_bytes():
    """Physical VMEM per TensorCore (64 MiB v7x, 128 MiB v5e/v6e)."""
    try:
        return int(pltpu.get_tpu_info().vmem_capacity_bytes)
    except Exception:
        return 64 << 20  # conservative (v7x)


def _spec(shape, index_map, mode=None):
    if mode is None:
        return pl.BlockSpec(shape, index_map)
    return pl.BlockSpec(shape, index_map, pipeline_mode=mode)


# --------------------------------------------------------------------------
# kernel 1: h2 = tanh(L2(tanh(L1(x))))   grid = (batch tiles i, W2 panels j)
# --------------------------------------------------------------------------
def _l12_kernel(x_ref, w1_ref, b1_ref, w2_ref, b2_ref, h2_ref, h1_ref):
    cdt = w1_ref.dtype  # MXU compute dtype (bf16)

    # Layer 1 once per batch tile, cached in VMEM scratch (bf16, matches ref).
    @pl.when(pl.program_id(1) == 0)
    def _():
        x = x_ref[...].astype(cdt)
        h1 = jnp.dot(x, w1_ref[...], preferred_element_type=jnp.float32)
        h1_ref[...] = jnp.tanh(h1 + b1_ref[...]).astype(h1_ref.dtype)

    # Layer 2: one W2 column panel per inner step (streams W2 for large dim).
    h2 = jnp.dot(h1_ref[...], w2_ref[...], preferred_element_type=jnp.float32)
    h2_ref[...] = jnp.tanh(h2 + b2_ref[...]).astype(h2_ref.dtype)


def _l12_forward(x, w1, b1, w2, b2, *, bm, tn2):
    B, dim = x.shape
    d1, d2 = w1.shape[1], w2.shape[1]
    n2 = d2 // tn2
    cdt = w1.dtype
    wb = jnp.dtype(cdt).itemsize
    fb = 4

    single = pl.Buffered(1)
    w2_mode = single if n2 == 1 else None  # double buffer only if streamed

    w2_bufs = 1 if n2 == 1 else 2
    vmem_bytes = (
        dim * d1 * wb + d1 * fb                       # W1, b1 (single buffered)
        + w2_bufs * (d1 * tn2 * wb + tn2 * fb)        # W2/b2 panel(s)
        + 2 * bm * dim * x.dtype.itemsize             # x tile (double buffered)
        + 2 * bm * tn2 * wb                           # h2 out tile
        + bm * d1 * wb                                # h1 scratch
        + bm * (d1 + tn2) * fb                        # f32 temporaries
    )
    vmem_limit = min(int(vmem_bytes * 1.5) + (2 << 20), _device_vmem_bytes())

    cost = pl.CostEstimate(
        flops=2 * B * (dim * d1 + d1 * d2),
        transcendentals=B * (d1 + d2),
        bytes_accessed=(B * dim * x.dtype.itemsize
                        + dim * d1 * wb
                        + (B // bm if n2 > 1 else 1) * d1 * d2 * wb
                        + (d1 + d2) * fb
                        + B * d2 * wb),
    )

    return pl.pallas_call(
        _l12_kernel,
        out_shape=jax.ShapeDtypeStruct((B, d2), cdt),
        grid_spec=pltpu.PrefetchScalarGridSpec(
            num_scalar_prefetch=0,
            grid=(B // bm, n2),
            in_specs=[
                pl.BlockSpec((bm, dim), lambda i, j: (i, 0)),        # x
                _spec((dim, d1), lambda i, j: (0, 0), single),       # W1
                _spec((1, d1),   lambda i, j: (0, 0), single),       # b1
                _spec((d1, tn2), lambda i, j: (0, j), w2_mode),      # W2 panel
                _spec((1, tn2),  lambda i, j: (0, j), w2_mode),      # b2 panel
            ],
            out_specs=pl.BlockSpec((bm, tn2), lambda i, j: (i, j)),
            scratch_shapes=[pltpu.VMEM((bm, d1), cdt)],              # h1 cache
        ),
        compiler_params=pltpu.CompilerParams(
            dimension_semantics=("parallel", "arbitrary"),
            vmem_limit_bytes=vmem_limit),
        cost_estimate=cost,
    )(x, w1, b1, w2, b2)


# --------------------------------------------------------------------------
# kernel 2: out = tanh(h2 @ W3 + b3)   grid = (W3 panels j OUTER, batch i)
#   -> W3 (the dominant HBM stream) is read exactly once.
# --------------------------------------------------------------------------
def _l3_kernel(h2_ref, w3_ref, b3_ref, o_ref):
    h3 = jnp.dot(h2_ref[...], w3_ref[...], preferred_element_type=jnp.float32)
    o_ref[...] = jnp.tanh(h3 + b3_ref[...]).astype(o_ref.dtype)


def _l3_forward(h2, w3, b3, *, bm, tn, out_dtype):
    B, d2 = h2.shape
    d3 = w3.shape[1]
    n_chunks = d3 // tn
    cdt = w3.dtype
    wb = jnp.dtype(cdt).itemsize
    fb = 4
    ob = jnp.dtype(out_dtype).itemsize

    # Single buffer when W3 never changes; deeper prefetch when panelled so
    # the next panel DMA rides over the panel boundary.
    w3_mode = pl.Buffered(1) if n_chunks == 1 else pl.Buffered(3)
    w3_bufs = 1 if n_chunks == 1 else 3

    vmem_bytes = (
        w3_bufs * (d2 * tn * wb + tn * fb)   # W3 / b3 panel buffers
        + 2 * bm * d2 * wb                   # h2 tile (double buffered)
        + 2 * bm * tn * ob                   # output tile (double buffered)
        + bm * tn * fb                       # f32 matmul result before tanh
    )
    vmem_limit = min(int(vmem_bytes * 1.5) + (2 << 20), _device_vmem_bytes())

    cost = pl.CostEstimate(
        flops=2 * B * d2 * d3,
        transcendentals=B * d3,
        bytes_accessed=(n_chunks * B * d2 * wb     # h2 re-read once per panel
                        + d2 * d3 * wb             # W3 read once
                        + d3 * fb
                        + B * d3 * ob),
    )

    return pl.pallas_call(
        _l3_kernel,
        out_shape=jax.ShapeDtypeStruct((B, d3), out_dtype),
        grid_spec=pltpu.PrefetchScalarGridSpec(
            num_scalar_prefetch=0,
            grid=(n_chunks, B // bm),                               # panel OUTER
            in_specs=[
                pl.BlockSpec((bm, d2), lambda j, i: (i, 0)),        # h2 tile
                _spec((d2, tn), lambda j, i: (0, j), w3_mode),      # W3 panel
                _spec((1, tn),  lambda j, i: (0, j), w3_mode),      # b3 panel
            ],
            out_specs=pl.BlockSpec((bm, tn), lambda j, i: (i, j)),
        ),
        compiler_params=pltpu.CompilerParams(
            dimension_semantics=("parallel", "parallel"),
            vmem_limit_bytes=vmem_limit),
        cost_estimate=cost,
    )(h2, w3, b3)


# --------------------------------------------------------------------------
# wrapper
# --------------------------------------------------------------------------
def augment_f_forward(x, params, *, block_batch=None, block_n=None,
                      block_batch12=None, block_n2=None, out_dtype=None):
    """x: (B, dim).  Returns (B, dim, dim) in `out_dtype` (default x.dtype)."""
    w1, b1, w2, b2, w3, b3 = params
    B, dim = x.shape
    d1, d2, d3 = 4 * dim, 8 * dim, dim * dim
    assert w1.shape == (dim, d1) and w2.shape == (d1, d2) and w3.shape == (d2, d3)
    out_dtype = x.dtype if out_dtype is None else out_dtype
    wb = jnp.dtype(w1.dtype).itemsize

    # Batch tile: large enough to hide the W3 panel DMA at panel boundaries
    # (needs ~717 flops/byte on v6e, ~311 on v7x; flops/byte == bm) and to
    # amortize the ~0.35us/step grid overhead; sublane (8) aligned.
    bm = (block_batch if block_batch is not None
          else _largest_aligned_divisor(B, 1024, 8))
    assert B % bm == 0, (B, bm)
    bm12 = block_batch12 if block_batch12 is not None else bm
    assert B % bm12 == 0, (B, bm12)

    # d3 column panel: lane-aligned (x128) for unmasked output stores; bounds
    # VMEM/vreg pressure and lets W3 stream in panels.
    tn = (block_n if block_n is not None
          else _largest_aligned_divisor(d3, 512, 128))
    assert d3 % tn == 0, (d3, tn)

    # Stream W2 in column panels only when it would blow the VMEM budget
    # (e.g. dim >= ~512 on v7x's 64 MiB); otherwise keep it fully resident.
    if block_n2 is not None:
        tn2 = block_n2
    elif d1 * d2 * wb > (16 << 20):
        tn2 = _largest_aligned_divisor(d2, 2048, 128)
    else:
        tn2 = d2
    assert d2 % tn2 == 0, (d2, tn2)

    h2 = _l12_forward(x, w1, b1, w2, b2, bm=bm12, tn2=tn2)
    out_flat = _l3_forward(h2, w3, b3, bm=bm, tn=tn, out_dtype=out_dtype)

    # .view(-1, dim, dim) from the PyTorch module (pure reshape, no compute).
    return out_flat.reshape(-1, dim, dim)


# --------------------------------------------------------------------------
# params / reference
# --------------------------------------------------------------------------
def init_params(key, dim, *, weight_dtype=jnp.bfloat16, bias_dtype=jnp.float32):
    """PyTorch-style uniform(-1/sqrt(fan_in), 1/sqrt(fan_in)) init.
    Weights stored (in_features, out_features); weights bf16, biases f32."""
    d1, d2, d3 = 4 * dim, 8 * dim, dim * dim
    ks = jax.random.split(key, 6)

    def u(k, shape, fan_in, dtype):
        bound = 1.0 / (fan_in ** 0.5)
        return jax.random.uniform(k, shape, jnp.float32,
                                  minval=-bound, maxval=bound).astype(dtype)

    w1 = u(ks[0], (dim, d1), dim, weight_dtype)
    b1 = u(ks[1], (1, d1), dim, bias_dtype)
    w2 = u(ks[2], (d1, d2), d1, weight_dtype)
    b2 = u(ks[3], (1, d2), d1, bias_dtype)
    w3 = u(ks[4], (d2, d3), d2, weight_dtype)
    b3 = u(ks[5], (1, d3), d2, bias_dtype)
    return (w1, b1, w2, b2, w3, b3)


def reference_forward(x, params):
    """Pure-JAX reference with the same numerics (bf16 MXU inputs, f32 accum)."""
    w1, b1, w2, b2, w3, b3 = params
    cdt = w1.dtype
    h = jnp.tanh(jnp.dot(x.astype(cdt), w1, preferred_element_type=jnp.float32) + b1)
    h = jnp.tanh(jnp.dot(h.astype(cdt), w2, preferred_element_type=jnp.float32) + b2)
    h = jnp.tanh(jnp.dot(h.astype(cdt), w3, preferred_element_type=jnp.float32) + b3)
    dim = x.shape[-1]
    return h.astype(x.dtype).reshape(-1, dim, dim)


if __name__ == "__main__":
    dim = 16          # size_in
    batch = 256       # small demo batch

    key = jax.random.PRNGKey(0)
    kx, kp = jax.random.split(key)
    x = jax.random.normal(kx, (batch, dim), dtype=jnp.float32)
    params = init_params(kp, dim)

    ref = reference_forward(x, params)

    # Default tiling: bm=256, tn=dim*dim -> L3 grid=(1, 1), L1/L2 grid=(1, 1).
    out = jax.block_until_ready(augment_f_forward(x, params))
    assert out.shape == (batch, dim, dim), out.shape
    assert jnp.allclose(out, ref, atol=2e-3, rtol=2e-3), "mismatch vs reference"

    # Force both grid axes of the L3 kernel (W3 panel streaming + batch tiles):
    # bm=64, tn=128 -> L3 grid=(2, 4); exercises the single-pass-over-W3 path.
    out2 = jax.block_until_ready(
        augment_f_forward(x, params, block_batch=64, block_n=128))
    assert out2.shape == (batch, dim, dim), out2.shape
    assert jnp.allclose(out2, ref, atol=2e-3, rtol=2e-3), "mismatch (chunked d3)"

    print("KERNEL_OK")
</pallas_src>

<mosaic_0001>
module attributes {stable_mosaic.version = 11 : i64} {
  func.func @_l12_kernel(%arg0: i32, %arg1: i32, %arg2: memref<256x16xf32, #tpu.memory_space<vmem>>, %arg3: memref<16x64xbf16, #tpu.memory_space<vmem>>, %arg4: memref<1x64xf32, #tpu.memory_space<vmem>>, %arg5: memref<64x128xbf16, #tpu.memory_space<vmem>>, %arg6: memref<1x128xf32, #tpu.memory_space<vmem>>, %arg7: memref<256x128xbf16, #tpu.memory_space<vmem>>, %arg8: memref<256x64xbf16, #tpu.memory_space<vmem>>) attributes {dimension_semantics = [#tpu.dimension_semantics<parallel>, #tpu.dimension_semantics<arbitrary>], iteration_bounds = array<i64: 1, 1>, scalar_prefetch = 0 : i64, scratch_operands = 1 : i64, tpu.core_type = #tpu.core_type<tc>, window_params = [{transform_indices = @transform_0, window_bounds = array<i64: 256, 16>}, {pipeline_mode = #tpu.pipeline_mode<synchronous>, transform_indices = @transform_1, window_bounds = array<i64: 16, 64>}, {pipeline_mode = #tpu.pipeline_mode<synchronous>, transform_indices = @transform_2, window_bounds = array<i64: 1, 64>}, {pipeline_mode = #tpu.pipeline_mode<synchronous>, transform_indices = @transform_3, window_bounds = array<i64: 64, 128>}, {pipeline_mode = #tpu.pipeline_mode<synchronous>, transform_indices = @transform_4, window_bounds = array<i64: 1, 128>}, {transform_indices = @transform_5, window_bounds = array<i64: 256, 128>}]} {
    %c0_i32 = arith.constant 0 : i32
    %0 = arith.cmpi eq, %arg1, %c0_i32 : i32
    %1 = arith.extui %0 : i1 to i32
    %c0_i32_0 = arith.constant 0 : i32
    %2 = arith.cmpi ne, %1, %c0_i32_0 : i32
    scf.if %2 {
      %c0_8 = arith.constant 0 : index
      %c0_9 = arith.constant 0 : index
      %12 = vector.load %arg2[%c0_8, %c0_9] : memref<256x16xf32, #tpu.memory_space<vmem>>, vector<256x16xf32>
      %13 = arith.truncf %12 : vector<256x16xf32> to vector<256x16xbf16>
      %c0_10 = arith.constant 0 : index
      %c0_11 = arith.constant 0 : index
      %14 = vector.load %arg3[%c0_10, %c0_11] : memref<16x64xbf16, #tpu.memory_space<vmem>>, vector<16x64xbf16>
      %cst_12 = arith.constant dense<0.000000e+00> : vector<256x64xf32>
      %15 = tpu.matmul %13, %14, %cst_12 {dimension_numbers = #tpu.dot_dimension_numbers<[1], [0], [0], [1], [0, 0, 1, 1], [], []>} : vector<256x16xbf16>, vector<16x64xbf16>, vector<256x64xf32> -> vector<256x64xf32>
      %c0_13 = arith.constant 0 : index
      %c0_14 = arith.constant 0 : index
      %16 = vector.load %arg4[%c0_13, %c0_14] : memref<1x64xf32, #tpu.memory_space<vmem>>, vector<1x64xf32>
      %17 = vector.broadcast %16 : vector<1x64xf32> to vector<256x64xf32>
      %18 = arith.addf %15, %17 : vector<256x64xf32>
      %19 = math.tanh %18 : vector<256x64xf32>
      %20 = arith.truncf %19 : vector<256x64xf32> to vector<256x64xbf16>
      %c0_15 = arith.constant 0 : index
      %c0_16 = arith.constant 0 : index
      %21 = vector.load %arg8[%c0_15, %c0_16] : memref<256x64xbf16, #tpu.memory_space<vmem>>, vector<256x64xbf16>
      tpu.vector_store %arg8[%c0_15, %c0_16], %20 {strides = array<i32>} : memref<256x64xbf16, #tpu.memory_space<vmem>>, vector<256x64xbf16>,
    } else {
    }
    %c0 = arith.constant 0 : index
    %c0_1 = arith.constant 0 : index
    %3 = vector.load %arg8[%c0, %c0_1] : memref<256x64xbf16, #tpu.memory_space<vmem>>, vector<256x64xbf16>
    %c0_2 = arith.constant 0 : index
    %c0_3 = arith.constant 0 : index
    %4 = vector.load %arg5[%c0_2, %c0_3] : memref<64x128xbf16, #tpu.memory_space<vmem>>, vector<64x128xbf16>
    %cst = arith.constant dense<0.000000e+00> : vector<256x128xf32>
    %5 = tpu.matmul %3, %4, %cst {dimension_numbers = #tpu.dot_dimension_numbers<[1], [0], [0], [1], [0, 0, 1, 1], [], []>} : vector<256x64xbf16>, vector<64x128xbf16>, vector<256x128xf32> -> vector<256x128xf32>
    %c0_4 = arith.constant 0 : index
    %c0_5 = arith.constant 0 : index
    %6 = vector.load %arg6[%c0_4, %c0_5] : memref<1x128xf32, #tpu.memory_space<vmem>>, vector<1x128xf32>
    %7 = vector.broadcast %6 : vector<1x128xf32> to vector<256x128xf32>
    %8 = arith.addf %5, %7 : vector<256x128xf32>
    %9 = math.tanh %8 : vector<256x128xf32>
    %10 = arith.truncf %9 : vector<256x128xf32> to vector<256x128xbf16>
    %c0_6 = arith.constant 0 : index
    %c0_7 = arith.constant 0 : index
    %11 = vector.load %arg7[%c0_6, %c0_7] : memref<256x128xbf16, #tpu.memory_space<vmem>>, vector<256x128xbf16>
    tpu.vector_store %arg7[%c0_6, %c0_7], %10 {strides = array<i32>} : memref<256x128xbf16, #tpu.memory_space<vmem>>, vector<256x128xbf16>,
    return
  }
  func.func @transform_0(%arg0: i32, %arg1: i32) -> (i32, i32) {
    %c0_i32 = arith.constant 0 : i32
    %c0_i32_0 = arith.constant 0 : i32
    return %arg0, %c0_i32 : i32, i32
  }
  func.func @transform_1(%arg0: i32, %arg1: i32) -> (i32, i32) {
    %c0_i32 = arith.constant 0 : i32
    %c0_i32_0 = arith.constant 0 : i32
    %c0_i32_1 = arith.constant 0 : i32
    return %c0_i32, %c0_i32_0 : i32, i32
  }
  func.func @transform_2(%arg0: i32, %arg1: i32) -> (i32, i32) {
    %c0_i32 = arith.constant 0 : i32
    %c0_i32_0 = arith.constant 0 : i32
    %c0_i32_1 = arith.constant 0 : i32
    return %c0_i32, %c0_i32_0 : i32, i32
  }
  func.func @transform_3(%arg0: i32, %arg1: i32) -> (i32, i32) {
    %c0_i32 = arith.constant 0 : i32
    %c0_i32_0 = arith.constant 0 : i32
    return %c0_i32, %arg1 : i32, i32
  }
  func.func @transform_4(%arg0: i32, %arg1: i32) -> (i32, i32) {
    %c0_i32 = arith.constant 0 : i32
    %c0_i32_0 = arith.constant 0 : i32
    return %c0_i32, %arg1 : i32, i32
  }
  func.func @transform_5(%arg0: i32, %arg1: i32) -> (i32, i32) {
    %c0_i32 = arith.constant 0 : i32
    return %arg0, %arg1 : i32, i32
  }
}

</mosaic_0001>

<bundles_post_ra>
// kernel: tpu_custom_call.1
= control target key start
LH: loop header
LB: loop body
LE: loop exit
PB: predicated region body
PF: predicated region fallthrough
CT: control target
= control target key end

     0   :  { %vm89_vm0 = vcmask 130048   ;;  %s1909_s0 = inlined_call_operand.vmem [shape: f32[256,16], index: 0, kind: input, shape index: {}]   ;;  %s1910_s1 = inlined_call_operand.vmem [shape: bf16[16,64], index: 1, kind: input, shape index: {}]   ;;  %s1911_s2 = inlined_call_operand.vmem [shape: f32[1,64], index: 2, kind: input, shape index: {}]   ;;  %s1912_s3 = inlined_call_operand.vmem [shape: bf16[64,128], index: 3, kind: input, shape index: {}]   ;;  %s1913_s4 = inlined_call_operand.vmem [shape: f32[1,128], index: 4, kind: input, shape index: {}]   ;;  %s1914_s5 = inlined_call_operand.hbm [shape: bf16[256,128], index: 5, kind: output, shape index: {}]  }
   0x1   :  { %v1453_v0 = vld [vmem:[%s1910_s1] sm:$0xff]   ;;  %v27_v2 = vld [vmem:[%s1909_s0 + $0x8] sm:$0xff]  ;;  %v28_v3 = vld [vmem:[%s1909_s0 + $0x10] sm:$0xff] }
   0x2   :  { %v26_v1 = vld [vmem:[%s1909_s0] sm:$0xff]  ;;  %1376 = vmatprep.subr.bf16.mxu0 %v1453_v0  ;;  %v29_v5 = vld [vmem:[%s1909_s0 + $0x18] sm:$0xff]  ;;  %v31_v7 = vld [vmem:[%s1909_s0 + $0x28] sm:$0xff] }
   0x3   :  { %v58_v4 = vpack.c.bf16 %v27_v2, %v26_v1  ;;  %v30_v6 = vld [vmem:[%s1909_s0 + $0x20] sm:$0xff]  ;;  %1377 = vmatpush3.bf16.msra.mxu0 %v1453_v0  ;;  %v59_v8 = vpack.c.bf16 %v29_v5, %v28_v3  ;;  %v32_v10 = vld [vmem:[%s1909_s0 + $0x30] sm:$0xff]  ;;  %v33_v11 = vld [vmem:[%s1909_s0 + $0x38] sm:$0xff] }
   0x4   :  { %v60_v9 = vpack.c.bf16 %v31_v7, %v30_v6  ;;  %v34_v12 = vld [vmem:[%s1909_s0 + $0x40] sm:$0xff]  ;;  %v35_v13 = vld [vmem:[%s1909_s0 + $0x48] sm:$0xff]  ;;  %v61_v14 = vpack.c.bf16 %v33_v11, %v32_v10 }
   0x5   :  { %1378 = vmatprep.mubr.msk.bf16.mxu0 %vm89_vm0, %v58_v4  ;;  %v62_v15 = vpack.c.bf16 %v35_v13, %v34_v12 }
   0x6   :  { %1379 = vmatmul.mubr.msk.bf16.vlgmr.msra.gmra.mxu0 %vm89_vm0, %v59_v8 }
   0x7   :  { %1382 = vmatprep.mubr.msk.bf16.mxu0 %vm89_vm0, %v60_v9 }
   0xe   :  { %1383 = vmatmul.mubr.msk.bf16.gmra.mxu0 %vm89_vm0, %v61_v14 }
   0xf   :  { %10 = vsyncpa [#allocation4], 0  ;;  %1386 = vmatprep.mubr.msk.bf16.mxu0 %vm89_vm0, %v62_v15  ;;  %v36_v16 = vld [vmem:[%s1909_s0 + $0x50] sm:$0xff]  ;;  %v37_v17 = vld [vmem:[%s1909_s0 + $0x58] sm:$0xff]  ;;  %vm459_vm1 = vcmask 519168   ;;  %vm643_vm2 = vcmask 523264  }
  0x10   :  { %v38_v18 = vld [vmem:[%s1909_s0 + $0x60] sm:$0xff]  ;;  %v39_v19 = vld [vmem:[%s1909_s0 + $0x68] sm:$0xff]  ;;  %v63_v20 = vpack.c.bf16 %v37_v17, %v36_v16  ;;  %v40_v22 = vld [vmem:[%s1909_s0 + $0x70] sm:$0xff] }
  0x11   :  { %v64_v21 = vpack.c.bf16 %v39_v19, %v38_v18  ;;  %v41_v23 = vld [vmem:[%s1909_s0 + $0x78] sm:$0xff]  ;;  %v42_v24 = vld [vmem:[%s1909_s0 + $0x80] sm:$0xff]  ;;  %v43_v25 = vld [vmem:[%s1909_s0 + $0x88] sm:$0xff] }
  0x12   :  { %v65_v26 = vpack.c.bf16 %v41_v23, %v40_v22  ;;  %v66_v27 = vpack.c.bf16 %v43_v25, %v42_v24  ;;  %v44_v28 = vld [vmem:[%s1909_s0 + $0x90] sm:$0xff]  ;;  %v45_v29 = vld [vmem:[%s1909_s0 + $0x98] sm:$0xff]  ;;  %v46_v30 = vld [vmem:[%s1909_s0 + $0xa0] sm:$0xff] }
  0x13   :  { %v47_v31 = vld [vmem:[%s1909_s0 + $0xa8] sm:$0xff]  ;;  %v67_v32 = vpack.c.bf16 %v45_v29, %v44_v28  ;;  %v48_v34 = vld [vmem:[%s1909_s0 + $0xb0] sm:$0xff]  ;;  %v49_v35 = vld [vmem:[%s1909_s0 + $0xb8] sm:$0xff] }
  0x14   :  { %v68_v33 = vpack.c.bf16 %v47_v31, %v46_v30  ;;  %v50_v36 = vld [vmem:[%s1909_s0 + $0xc0] sm:$0xff]  ;;  %v51_v37 = vld [vmem:[%s1909_s0 + $0xc8] sm:$0xff]  ;;  %v69_v38 = vpack.c.bf16 %v49_v35, %v48_v34  ;;  %v52_v40 = vld [vmem:[%s1909_s0 + $0xd0] sm:$0xff] }
  0x15   :  { %v70_v39 = vpack.c.bf16 %v51_v37, %v50_v36  ;;  %v53_v41 = vld [vmem:[%s1909_s0 + $0xd8] sm:$0xff]  ;;  %v54_v42 = vld [vmem:[%s1909_s0 + $0xe0] sm:$0xff]  ;;  %v55_v43 = vld [vmem:[%s1909_s0 + $0xe8] sm:$0xff] }
  0x16   :  { %1387 = vmatmul.mubr.msk.bf16.gmra.mxu0 %vm89_vm0, %v63_v20  ;;  %v71_v44 = vpack.c.bf16 %v53_v41, %v52_v40  ;;  %v72_v45 = vpack.c.bf16 %v55_v43, %v54_v42  ;;  %v56_v46 = vld [vmem:[%s1909_s0 + $0xf0] sm:$0xff]  ;;  %v57_v47 = vld [vmem:[%s1909_s0 + $0xf8] sm:$0xff]  ;;  %v1456_v51 = vld [vmem:[%s1912_s3 + $0x8] sm:$0xff]  }
  0x17   :  { %1390 = vmatprep.mubr.msk.bf16.mxu0 %vm89_vm0, %v64_v21  ;;  %v73_v48 = vpack.c.bf16 %v57_v47, %v56_v46  ;;  %v1454_v49 = vld [vmem:[%s1912_s3 + $0x18] sm:$0xff]   ;;  %v1455_v50 = vld [vmem:[%s1912_s3 + $0x10] sm:$0xff]   ;;  %v1457_v52 = vld [vmem:[%s1912_s3] sm:$0xff]  }
  0x18   :  { %1410 = vmatprep.subr.bf16.mxu1 %v1454_v49  ;;  %v1787_v53 = vld [vmem:[%s1911_s2] ss:$0 sm:$0xff] }
  0x19   :  { %1411 = vmatpush3.bf16.msra.mxu1 %v1454_v49 }
  0x1a   :  { %1412 = vmatprep.subr.bf16.mxu1 %v1455_v50 }
  0x1d   :  { %1413 = vmatpush3.bf16.msra.mxu1 %v1455_v50 }
  0x1e   :  { %1391 = vmatmul.mubr.msk.bf16.gmra.mxu0 %vm89_vm0, %v65_v26  ;;  %1414 = vmatprep.subr.bf16.mxu1 %v1456_v51 }
  0x1f   :  { %1394 = vmatprep.mubr.msk.bf16.mxu0 %vm89_vm0, %v66_v27 }
  0x21   :  { %1415 = vmatpush3.bf16.msra.mxu1 %v1456_v51 }
  0x22   :  { %1416 = vmatprep.subr.bf16.mxu1 %v1457_v52 }
  0x25   :  { %1417 = vmatpush3.bf16.msra.mxu1 %v1457_v52 }
  0x26   :  { %1395 = vmatmul.mubr.msk.bf16.gmra.mxu0 %vm89_vm0, %v67_v32 }
  0x27   :  { %1398 = vmatprep.mubr.msk.bf16.mxu0 %vm89_vm0, %v68_v33 }
  0x2e   :  { %1399 = vmatmul.mubr.msk.bf16.gmra.mxu0 %vm89_vm0, %v69_v38 }
  0x2f   :  { %1402 = vmatprep.mubr.msk.bf16.mxu0 %vm89_vm0, %v70_v39 }
  0x36   :  { %1403 = vmatmul.mubr.msk.bf16.gmra.mxu0 %vm89_vm0, %v71_v44 }
  0x37   :  { %1406 = vmatprep.mubr.msk.bf16.mxu0 %vm89_vm0, %v72_v45 }
  0x3e   :  { %1407 = vmatmul.mubr.msk.bf16.gmra.mxu0 %vm89_vm0, %v73_v48 }
  0xc6   :  { %v1380_v54 = vpop.f32.mrf.mxu0 }
  0xc7   :  { %v181_v55 = vadd.f32 %v1380_v54, %v1787_v53 }
  0xc8   :  { %v172_v56 = vpop.f32.mrf.mxu0 }
  0xc9   :  { %1474 = vtanh.f32 %v181_v55  ;;  %v173_v57 = vadd.f32 %v1787_v53, %v172_v56 }
  0xca   :  { %v1381_v58 = vpop.f32.mrf.mxu0 }
  0xcb   :  { %1476 = vtanh.f32 %v173_v57  ;;  %v184_v59 = vadd.f32 %v1381_v58, %v1787_v53 }
  0xcc   :  { %v175_v60 = vpop.f32.mrf.mxu0 }
  0xcd   :  { %1478 = vtanh.f32 %v184_v59  ;;  %v176_v61 = vadd.f32 %v1787_v53, %v175_v60 }
  0xce   :  { %v1384_v62 = vpop.f32.mrf.mxu0 }
  0xcf   :  { %1480 = vtanh.f32 %v176_v61  ;;  %v197_v63 = vadd.f32 %v1384_v62, %v1787_v53 }
  0xd0   :  { %v188_v0 = vpop.f32.mrf.mxu0 }
  0xd1   :  { %1482 = vtanh.f32 %v197_v63  ;;  %v189_v1 = vadd.f32 %v1787_v53, %v188_v0 }
  0xd2   :  { %v1385_v2 = vpop.f32.mrf.mxu0 }
  0xd3   :  { %1484 = vtanh.f32 %v189_v1  ;;  %v200_v3 = vadd.f32 %v1385_v2, %v1787_v53 }
  0xd4   :  { %v191_v4 = vpop.f32.mrf.mxu0 }
  0xd5   :  { %1486 = vtanh.f32 %v200_v3  ;;  %v192_v5 = vadd.f32 %v1787_v53, %v191_v4 }
  0xd6   :  { %v1475_v6 = vpop.eup %1474  ;;  %v1388_v7 = vpop.f32.mrf.mxu0 }
  0xd7   :  { %v1182_v8 = vpack.c.bf16 %v1475_v6, %v1475_v6  ;;  %1488 = vtanh.f32 %v192_v5  ;;  %v213_v9 = vadd.f32 %v1388_v7, %v1787_v53 }
  0xd8   :  { %v1477_v10 = vpop.eup %1476  ;;  %v204_v11 = vpop.f32.mrf.mxu0 }
  0xd9   :  { %462 = vst.msk [vmem:[#allocation2 + $0x8] sm:$0xf] %vm459_vm1, %v1182_v8  ;;  %v1180_v12 = vpack.c.bf16 %v1477_v10, %v1477_v10  ;;  %1490 = vtanh.f32 %v213_v9  ;;  %v205_v13 = vadd.f32 %v1787_v53, %v204_v11 }
  0xda   :  { %v1479_v14 = vpop.eup %1478  ;;  %v1389_v15 = vpop.f32.mrf.mxu0 }
  0xdb   :  { %460 = vst.msk [vmem:[#allocation2] sm:$0xf] %vm459_vm1, %v1180_v12  ;;  %v1183_v16 = vpack.c.bf16 %v1479_v14, %v1479_v14  ;;  %1492 = vtanh.f32 %v205_v13  ;;  %v216_v17 = vadd.f32 %v1389_v15, %v1787_v53 }
  0xdc   :  { %v1481_v18 = vpop.eup %1480  ;;  %v207_v19 = vpop.f32.mrf.mxu0 }
  0xdd   :  { %463 = vst.msk [vmem:[#allocation2 + $0xc] sm:$0xf] %vm459_vm1, %v1183_v16  ;;  %v1181_v20 = vpack.c.bf16 %v1481_v18, %v1481_v18  ;;  %1494 = vtanh.f32 %v216_v17  ;;  %v208_v21 = vadd.f32 %v1787_v53, %v207_v19 }
  0xde   :  { %v1483_v22 = vpop.eup %1482  ;;  %v1392_v23 = vpop.f32.mrf.mxu0 }
  0xdf   :  { %461 = vst.msk [vmem:[#allocation2 + $0x4] sm:$0xf] %vm459_vm1, %v1181_v20  ;;  %v1186_v24 = vpack.c.bf16 %v1483_v22, %v1483_v22  ;;  %1496 = vtanh.f32 %v208_v21  ;;  %v229_v25 = vadd.f32 %v1392_v23, %v1787_v53 }
  0xe0   :  { %v1485_v26 = vpop.eup %1484  ;;  %v220_v27 = vpop.f32.mrf.mxu0 }
  0xe1   :  { %466 = vst.msk [vmem:[#allocation2 + $0x18] sm:$0xf] %vm459_vm1, %v1186_v24  ;;  %v1184_v28 = vpack.c.bf16 %v1485_v26, %v1485_v26  ;;  %1498 = vtanh.f32 %v229_v25  ;;  %v221_v29 = vadd.f32 %v1787_v53, %v220_v27 }
  0xe2   :  { %v1487_v30 = vpop.eup %1486  ;;  %v1393_v31 = vpop.f32.mrf.mxu0 }
  0xe3   :  { %464 = vst.msk [vmem:[#allocation2 + $0x10] sm:$0xf] %vm459_vm1, %v1184_v28  ;;  %v1187_v32 = vpack.c.bf16 %v1487_v30, %v1487_v30  ;;  %1500 = vtanh.f32 %v221_v29  ;;  %v232_v33 = vadd.f32 %v1393_v31, %v1787_v53 }
  0xe4   :  { %v1489_v34 = vpop.eup %1488  ;;  %v223_v35 = vpop.f32.mrf.mxu0  ;;  %v1459_v43 = vld [vmem:[#allocation2 + $0x8] sm:$0xff]  }
  0xe5   :  { %467 = vst.msk [vmem:[#allocation2 + $0x1c] sm:$0xf] %vm459_vm1, %v1187_v32  ;;  %v1185_v36 = vpack.c.bf16 %v1489_v34, %v1489_v34  ;;  %1502 = vtanh.f32 %v232_v33  ;;  %v224_v37 = vadd.f32 %v1787_v53, %v223_v35 }
  0xe6   :  { %v1491_v38 = vpop.eup %1490  ;;  %v1396_v39 = vpop.f32.mrf.mxu0  ;;  %v1458_v40 = vld [vmem:[#allocation2] sm:$0xff]  }
  0xe7   :  { %465 = vst.msk [vmem:[#allocation2 + $0x14] sm:$0xf] %vm459_vm1, %v1185_v36  ;;  %v1190_v41 = vpack.c.bf16 %v1491_v38, %v1491_v38  ;;  %1504 = vtanh.f32 %v224_v37  ;;  %v245_v42 = vadd.f32 %v1396_v39, %v1787_v53  ;;  %1418 = vmatprep.mubr.msk.bf16.mxu1 %vm643_vm2, %v1458_v40 }
  0xe8   :  { %v1493_v44 = vpop.eup %1492  ;;  %v236_v45 = vpop.f32.mrf.mxu0  ;;  %1419 = vmatmul.mubr.msk.bf16.vlgmr.msra.gmra.mxu1 %vm643_vm2, %v1459_v43 }
  0xe9   :  { %470 = vst.msk [vmem:[#allocation2 + $0x28] sm:$0xf] %vm459_vm1, %v1190_v41  ;;  %v1188_v46 = vpack.c.bf16 %v1493_v44, %v1493_v44  ;;  %1506 = vtanh.f32 %v245_v42  ;;  %v237_v47 = vadd.f32 %v1787_v53, %v236_v45 }
  0xea   :  { %v1495_v48 = vpop.eup %1494  ;;  %v1397_v49 = vpop.f32.mrf.mxu0 }
  0xeb   :  { %468 = vst.msk [vmem:[#allocation2 + $0x20] sm:$0xf] %vm459_vm1, %v1188_v46  ;;  %v1191_v50 = vpack.c.bf16 %v1495_v48, %v1495_v48  ;;  %1508 = vtanh.f32 %v237_v47  ;;  %v248_v51 = vadd.f32 %v1397_v49, %v1787_v53 }
  0xec   :  { %v1497_v52 = vpop.eup %1496  ;;  %v239_v54 = vpop.f32.mrf.mxu0  ;;  %v1461_v62 = vld [vmem:[#allocation2 + $0x18] sm:$0xff]  }
  0xed   :  { %471 = vst.msk [vmem:[#allocation2 + $0x2c] sm:$0xf] %vm459_vm1, %v1191_v50  ;;  %v1189_v55 = vpack.c.bf16 %v1497_v52, %v1497_v52  ;;  %1510 = vtanh.f32 %v248_v51  ;;  %v240_v56 = vadd.f32 %v1787_v53, %v239_v54 }
  0xee   :  { %v1499_v57 = vpop.eup %1498  ;;  %v1400_v58 = vpop.f32.mrf.mxu0  ;;  %v1460_v59 = vld [vmem:[#allocation2 + $0x10] sm:$0xff]  }
  0xef   :  { %469 = vst.msk [vmem:[#allocation2 + $0x24] sm:$0xf] %vm459_vm1, %v1189_v55  ;;  %v1194_v60 = vpack.c.bf16 %v1499_v57, %v1499_v57  ;;  %1512 = vtanh.f32 %v240_v56  ;;  %v261_v61 = vadd.f32 %v1400_v58, %v1787_v53  ;;  %1422 = vmatprep.mubr.msk.bf16.mxu1 %vm643_vm2, %v1460_v59 }
  0xf0   :  { %v1501_v63 = vpop.eup %1500  ;;  %v252_v0 = vpop.f32.mrf.mxu0  ;;  %1423 = vmatmul.mubr.msk.bf16.gmra.mxu1 %vm643_vm2, %v1461_v62 }
  0xf1   :  { %474 = vst.msk [vmem:[#allocation2 + $0x38] sm:$0xf] %vm459_vm1, %v1194_v60  ;;  %v1192_v1 = vpack.c.bf16 %v1501_v63, %v1501_v63  ;;  %1514 = vtanh.f32 %v261_v61  ;;  %v253_v2 = vadd.f32 %v1787_v53, %v252_v0 }
  0xf2   :  { %v1503_v3 = vpop.eup %1502  ;;  %v1401_v4 = vpop.f32.mrf.mxu0 }
  0xf3   :  { %472 = vst.msk [vmem:[#allocation2 + $0x30] sm:$0xf] %vm459_vm1, %v1192_v1  ;;  %v1195_v5 = vpack.c.bf16 %v1503_v3, %v1503_v3  ;;  %1516 = vtanh.f32 %v253_v2  ;;  %v264_v6 = vadd.f32 %v1401_v4, %v1787_v53 }
  0xf4   :  { %v1505_v7 = vpop.eup %1504  ;;  %v255_v8 = vpop.f32.mrf.mxu0  ;;  %v1463_v16 = vld [vmem:[#allocation2 + $0x28] sm:$0xff]  }
  0xf5   :  { %475 = vst.msk [vmem:[#allocation2 + $0x3c] sm:$0xf] %vm459_vm1, %v1195_v5  ;;  %v1193_v9 = vpack.c.bf16 %v1505_v7, %v1505_v7  ;;  %1518 = vtanh.f32 %v264_v6  ;;  %v256_v10 = vadd.f32 %v1787_v53, %v255_v8  ;;  %v1872_v7 = vld [vmem:[%s1913_s4] ss:$0 sm:$0xff]  ;;  %s1624_s4 = smov [#allocation3]  }
  0xf6   :  { %v1507_v11 = vpop.eup %1506  ;;  %v1404_v12 = vpop.f32.mrf.mxu0  ;;  %v1462_v13 = vld [vmem:[#allocation2 + $0x20] sm:$0xff]   ;;  %s1050_s15 = sshll.u32 %s1624_s4, 4  ;;  %s1051_s15 = int_to_ptr.vmem [resolvable:$true] %s1050_s15 }
  0xf7   :  { %473 = vst.msk [vmem:[#allocation2 + $0x34] sm:$0xf] %vm459_vm1, %v1193_v9  ;;  %v1198_v14 = vpack.c.bf16 %v1507_v11, %v1507_v11  ;;  %1520 = vtanh.f32 %v256_v10  ;;  %v277_v15 = vadd.f32 %v1404_v12, %v1787_v53  ;;  %1426 = vmatprep.mubr.msk.bf16.mxu1 %vm643_vm2, %v1462_v13  ;;  %s1602_s16 = scalar_lea.vmem %s1051_s15, 2048  ;;  %p1607_p1 = scmp.lt.s32.totalorder %s1051_s15, %s1051_s15 }
  0xf8   :  { %v1509_v17 = vpop.eup %1508  ;;  %v268_v18 = vpop.f32.mrf.mxu0  ;;  %1427 = vmatmul.mubr.msk.bf16.gmra.mxu1 %vm643_vm2, %v1463_v16  ;;  %p1603_p0 = scmp.ne.s32.totalorder %s1051_s15, %s1602_s16  ;;  %p1608_p2 = scmp.lt.s32.totalorder %s1602_s16, %s1602_s16 }
  0xf9   :  { %478 = vst.msk [vmem:[#allocation2 + $0x48] sm:$0xf] %vm459_vm1, %v1198_v14  ;;  %v1196_v19 = vpack.c.bf16 %v1509_v17, %v1509_v17  ;;  %1522 = vtanh.f32 %v277_v15  ;;  %v269_v20 = vadd.f32 %v1787_v53, %v268_v18 }
  0xfa   :  { %v1511_v21 = vpop.eup %1510  ;;  %v1405_v22 = vpop.f32.mrf.mxu0  ;;  %p1609_p3 = por %p1608_p2, %p1607_p1 }
  0xfb   :  { %476 = vst.msk [vmem:[#allocation2 + $0x40] sm:$0xf] %vm459_vm1, %v1196_v19  ;;  %v1199_v23 = vpack.c.bf16 %v1511_v21, %v1511_v21  ;;  %1524 = vtanh.f32 %v269_v20  ;;  %v280_v24 = vadd.f32 %v1405_v22, %v1787_v53 }
  0xfc   :  { %v1513_v25 = vpop.eup %1512  ;;  %v271_v26 = vpop.f32.mrf.mxu0  ;;  %v1465_v34 = vld [vmem:[#allocation2 + $0x38] sm:$0xff]   ;;  %p1610_p4 = pnand %p1609_p3, %p1603_p0 }
  0xfd   :  { %479 = vst.msk [vmem:[#allocation2 + $0x4c] sm:$0xf] %vm459_vm1, %v1199_v23  ;;  %v1197_v27 = vpack.c.bf16 %v1513_v25, %v1513_v25  ;;  %1526 = vtanh.f32 %v280_v24  ;;  %v272_v28 = vadd.f32 %v1787_v53, %v271_v26 }
  0xfe   :  { %v1515_v29 = vpop.eup %1514  ;;  %v1408_v30 = vpop.f32.mrf.mxu0  ;;  %v1464_v31 = vld [vmem:[#allocation2 + $0x30] sm:$0xff]  }
  0xff   :  { %477 = vst.msk [vmem:[#allocation2 + $0x44] sm:$0xf] %vm459_vm1, %v1197_v27  ;;  %v1202_v32 = vpack.c.bf16 %v1515_v29, %v1515_v29  ;;  %1528 = vtanh.f32 %v272_v28  ;;  %v293_v33 = vadd.f32 %v1408_v30, %v1787_v53  ;;  %1430 = vmatprep.mubr.msk.bf16.mxu1 %vm643_vm2, %v1464_v31 }
 0x100   :  { %v1517_v35 = vpop.eup %1516  ;;  %v284_v36 = vpop.f32.mrf.mxu0  ;;  %1431 = vmatmul.mubr.msk.bf16.gmra.mxu1 %vm643_vm2, %v1465_v34 }
 0x101   :  { %482 = vst.msk [vmem:[#allocation2 + $0x58] sm:$0xf] %vm459_vm1, %v1202_v32  ;;  %v1200_v37 = vpack.c.bf16 %v1517_v35, %v1517_v35  ;;  %1530 = vtanh.f32 %v293_v33  ;;  %v285_v38 = vadd.f32 %v1787_v53, %v284_v36 }
 0x102   :  { %v1519_v39 = vpop.eup %1518  ;;  %v1409_v40 = vpop.f32.mrf.mxu0 }
 0x103   :  { %480 = vst.msk [vmem:[#allocation2 + $0x50] sm:$0xf] %vm459_vm1, %v1200_v37  ;;  %v1203_v41 = vpack.c.bf16 %v1519_v39, %v1519_v39  ;;  %1532 = vtanh.f32 %v285_v38  ;;  %v296_v42 = vadd.f32 %v1409_v40, %v1787_v53 }
 0x104   :  { %v1521_v43 = vpop.eup %1520  ;;  %v287_v44 = vpop.f32.mrf.mxu0  ;;  %v1467_v50 = vld [vmem:[#allocation2 + $0x48] sm:$0xff]  }
 0x105   :  { %483 = vst.msk [vmem:[#allocation2 + $0x5c] sm:$0xf] %vm459_vm1, %v1203_v41  ;;  %v1201_v45 = vpack.c.bf16 %v1521_v43, %v1521_v43  ;;  %1534 = vtanh.f32 %v296_v42  ;;  %v288_v46 = vadd.f32 %v1787_v53, %v287_v44 }
 0x106   :  { %v1523_v47 = vpop.eup %1522  ;;  %v1466_v48 = vld [vmem:[#allocation2 + $0x40] sm:$0xff]  }
 0x107   :  { %481 = vst.msk [vmem:[#allocation2 + $0x54] sm:$0xf] %vm459_vm1, %v1201_v45  ;;  %v1206_v49 = vpack.c.bf16 %v1523_v47, %v1523_v47  ;;  %1536 = vtanh.f32 %v288_v46  ;;  %1434 = vmatprep.mubr.msk.bf16.mxu1 %vm643_vm2, %v1466_v48 }
 0x108   :  { %v1525_v51 = vpop.eup %1524  ;;  %1435 = vmatmul.mubr.msk.bf16.gmra.mxu1 %vm643_vm2, %v1467_v50 }
 0x109   :  { %486 = vst.msk [vmem:[#allocation2 + $0x68] sm:$0xf] %vm459_vm1, %v1206_v49  ;;  %v1204_v52 = vpack.c.bf16 %v1525_v51, %v1525_v51 }
 0x10a   :  { %v1527_v54 = vpop.eup %1526 }
 0x10b   :  { %484 = vst.msk [vmem:[#allocation2 + $0x60] sm:$0xf] %vm459_vm1, %v1204_v52  ;;  %v1207_v55 = vpack.c.bf16 %v1527_v54, %v1527_v54 }
 0x10c   :  { %v1529_v53 = vpop.eup %1528  ;;  %v1469_v60 = vld [vmem:[#allocation2 + $0x58] sm:$0xff]  }
 0x10d   :  { %487 = vst.msk [vmem:[#allocation2 + $0x6c] sm:$0xf] %vm459_vm1, %v1207_v55  ;;  %v1205_v56 = vpack.c.bf16 %v1529_v53, %v1529_v53 }
 0x10e   :  { %v1531_v57 = vpop.eup %1530  ;;  %v1468_v58 = vld [vmem:[#allocation2 + $0x50] sm:$0xff]  }
 0x10f   :  { %485 = vst.msk [vmem:[#allocation2 + $0x64] sm:$0xf] %vm459_vm1, %v1205_v56  ;;  %v1210_v59 = vpack.c.bf16 %v1531_v57, %v1531_v57  ;;  %1438 = vmatprep.mubr.msk.bf16.mxu1 %vm643_vm2, %v1468_v58 }
 0x110   :  { %v1533_v61 = vpop.eup %1532  ;;  %1439 = vmatmul.mubr.msk.bf16.gmra.mxu1 %vm643_vm2, %v1469_v60 }
 0x111   :  { %490 = vst.msk [vmem:[#allocation2 + $0x78] sm:$0xf] %vm459_vm1, %v1210_v59  ;;  %v1208_v62 = vpack.c.bf16 %v1533_v61, %v1533_v61 }
 0x112   :  { %v1535_v63 = vpop.eup %1534 }
 0x113   :  { %488 = vst.msk [vmem:[#allocation2 + $0x70] sm:$0xf] %vm459_vm1, %v1208_v62  ;;  %v1211_v0 = vpack.c.bf16 %v1535_v63, %v1535_v63 }
 0x114   :  { %v1537_v1 = vpop.eup %1536  ;;  %v1471_v4 = vld [vmem:[#allocation2 + $0x68] sm:$0xff]  }
 0x115   :  { %491 = vst.msk [vmem:[#allocation2 + $0x7c] sm:$0xf] %vm459_vm1, %v1211_v0  ;;  %v1209_v2 = vpack.c.bf16 %v1537_v1, %v1537_v1 }
 0x116   :  { %v1470_v3 = vld [vmem:[#allocation2 + $0x60] sm:$0xff]  }
 0x117   :  { %489 = vst.msk [vmem:[#allocation2 + $0x74] sm:$0xf] %vm459_vm1, %v1209_v2  ;;  %1442 = vmatprep.mubr.msk.bf16.mxu1 %vm643_vm2, %v1470_v3 }
 0x118   :  { %1443 = vmatmul.mubr.msk.bf16.gmra.mxu1 %vm643_vm2, %v1471_v4 }
 0x11c   :  { %v1473_v6 = vld [vmem:[#allocation2 + $0x78] sm:$0xff]  }
 0x11e   :  { %v1472_v5 = vld [vmem:[#allocation2 + $0x70] sm:$0xff]  }
 0x11f   :  { %1446 = vmatprep.mubr.msk.bf16.mxu1 %vm643_vm2, %v1472_v5 }
 0x120   :  { %1447 = vmatmul.mubr.msk.bf16.gmra.mxu1 %vm643_vm2, %v1473_v6 }
 0x1a8   :  { %v1420_v8 = vpop.f32.mrf.mxu1 }
 0x1a9   :  { %v735_v9 = vadd.f32 %v1420_v8, %v1872_v7 }
 0x1aa   :  { %v726_v10 = vpop.f32.mrf.mxu1 }
 0x1ab   :  { %v727_v11 = vadd.f32 %v1872_v7, %v726_v10  ;;  %1538 = vtanh.f32 %v735_v9 }
 0x1ac   :  { %v1421_v12 = vpop.f32.mrf.mxu1 }
 0x1ad   :  { %v738_v13 = vadd.f32 %v1421_v12, %v1872_v7 }
 0x1ae   :  { %v729_v14 = vpop.f32.mrf.mxu1 }
 0x1af   :  { %1540 = vtanh.f32 %v738_v13  ;;  %v730_v15 = vadd.f32 %v1872_v7, %v729_v14 }
 0x1b0   :  { %1542 = vtanh.f32 %v727_v11  ;;  %v1424_v16 = vpop.f32.mrf.mxu1 }
 0x1b1   :  { %1544 = vtanh.f32 %v730_v15  ;;  %v751_v17 = vadd.f32 %v1424_v16, %v1872_v7 }
 0x1b2   :  { %v742_v18 = vpop.f32.mrf.mxu1 }
 0x1b3   :  { %v743_v19 = vadd.f32 %v1872_v7, %v742_v18  ;;  %1546 = vtanh.f32 %v751_v17 }
 0x1b4   :  { %v1425_v20 = vpop.f32.mrf.mxu1 }
 0x1b5   :  { %v754_v21 = vadd.f32 %v1425_v20, %v1872_v7 }
 0x1b6   :  { %v745_v22 = vpop.f32.mrf.mxu1 }
 0x1b7   :  { %1548 = vtanh.f32 %v754_v21  ;;  %v746_v23 = vadd.f32 %v1872_v7, %v745_v22 }
 0x1b8   :  { %1550 = vtanh.f32 %v743_v19  ;;  %v1428_v24 = vpop.f32.mrf.mxu1  ;;  %v1539_v27 = vpop.eup %1538 }
 0x1b9   :  { %1552 = vtanh.f32 %v746_v23  ;;  %v767_v25 = vadd.f32 %v1428_v24, %v1872_v7 }
 0x1ba   :  { %v758_v26 = vpop.f32.mrf.mxu1 }
 0x1bb   :  { %v759_v29 = vadd.f32 %v1872_v7, %v758_v26  ;;  %1554 = vtanh.f32 %v767_v25 }
 0x1bc   :  { %v1541_v28 = vpop.eup %1540  ;;  %v1429_v30 = vpop.f32.mrf.mxu1 }
 0x1bd   :  { %v1543_v31 = vpop.eup %1542  ;;  %v1252_v32 = vpack.c.bf16 %v1541_v28, %v1539_v27  ;;  %v770_v33 = vadd.f32 %v1429_v30, %v1872_v7 }
 0x1be   :  { %v1545_v34 = vpop.eup %1544  ;;  %v761_v35 = vpop.f32.mrf.mxu1 }
 0x1bf   :  { %1324 = vst [vmem:[#allocation3 + $0x8] sm:$0xff] %v1252_v32   ;;  %v1247_v36 = vpack.c.bf16 %v1545_v34, %v1543_v31  ;;  %1556 = vtanh.f32 %v770_v33  ;;  %v762_v37 = vadd.f32 %v1872_v7, %v761_v35 }
 0x1c0   :  { %1558 = vtanh.f32 %v759_v29  ;;  %v1432_v38 = vpop.f32.mrf.mxu1  ;;  %v1547_v41 = vpop.eup %1546 }
 0x1c1   :  { %1248 = vst [vmem:[#allocation3] sm:$0xff] %v1247_v36   ;;  %1560 = vtanh.f32 %v762_v37  ;;  %v783_v39 = vadd.f32 %v1432_v38, %v1872_v7 }
 0x1c2   :  { %v774_v40 = vpop.f32.mrf.mxu1 }
 0x1c3   :  { %v775_v43 = vadd.f32 %v1872_v7, %v774_v40  ;;  %1562 = vtanh.f32 %v783_v39 }
 0x1c4   :  { %v1549_v42 = vpop.eup %1548  ;;  %v1433_v44 = vpop.f32.mrf.mxu1 }
 0x1c5   :  { %v1551_v45 = vpop.eup %1550  ;;  %v1262_v46 = vpack.c.bf16 %v1549_v42, %v1547_v41  ;;  %v786_v47 = vadd.f32 %v1433_v44, %v1872_v7 }
 0x1c6   :  { %v1553_v48 = vpop.eup %1552  ;;  %v777_v49 = vpop.f32.mrf.mxu1 }
 0x1c7   :  { %1326 = vst [vmem:[#allocation3 + $0x18] sm:$0xff] %v1262_v46   ;;  %v1257_v50 = vpack.c.bf16 %v1553_v48, %v1551_v45  ;;  %1564 = vtanh.f32 %v786_v47  ;;  %v778_v51 = vadd.f32 %v1872_v7, %v777_v49 }
 0x1c8   :  { %1566 = vtanh.f32 %v775_v43  ;;  %v1436_v52 = vpop.f32.mrf.mxu1  ;;  %v1555_v53 = vpop.eup %1554 }
 0x1c9   :  { %1325 = vst [vmem:[#allocation3 + $0x10] sm:$0xff] %v1257_v50   ;;  %1568 = vtanh.f32 %v778_v51  ;;  %v799_v54 = vadd.f32 %v1436_v52, %v1872_v7 }
 0x1ca   :  { %v790_v55 = vpop.f32.mrf.mxu1 }
 0x1cb   :  { %v791_v57 = vadd.f32 %v1872_v7, %v790_v55  ;;  %1570 = vtanh.f32 %v799_v54 }
 0x1cc   :  { %v1557_v56 = vpop.eup %1556  ;;  %v1437_v58 = vpop.f32.mrf.mxu1 }
 0x1cd   :  { %v1559_v59 = vpop.eup %1558  ;;  %v1272_v60 = vpack.c.bf16 %v1557_v56, %v1555_v53  ;;  %v802_v61 = vadd.f32 %v1437_v58, %v1872_v7 }
 0x1ce   :  { %v1561_v62 = vpop.eup %1560  ;;  %v793_v63 = vpop.f32.mrf.mxu1 }
 0x1cf   :  { %1328 = vst [vmem:[#allocation3 + $0x28] sm:$0xff] %v1272_v60   ;;  %v1267_v0 = vpack.c.bf16 %v1561_v62, %v1559_v59  ;;  %1572 = vtanh.f32 %v802_v61  ;;  %v794_v1 = vadd.f32 %v1872_v7, %v793_v63 }
 0x1d0   :  { %1574 = vtanh.f32 %v791_v57  ;;  %v1440_v2 = vpop.f32.mrf.mxu1  ;;  %v1563_v5 = vpop.eup %1562 }
 0x1d1   :  { %1327 = vst [vmem:[#allocation3 + $0x20] sm:$0xff] %v1267_v0   ;;  %1576 = vtanh.f32 %v794_v1  ;;  %v815_v3 = vadd.f32 %v1440_v2, %v1872_v7 }
 0x1d2   :  { %v806_v4 = vpop.f32.mrf.mxu1 }
 0x1d3   :  { %v807_v8 = vadd.f32 %v1872_v7, %v806_v4  ;;  %1578 = vtanh.f32 %v815_v3 }
 0x1d4   :  { %v1565_v6 = vpop.eup %1564  ;;  %v1441_v9 = vpop.f32.mrf.mxu1 }
 0x1d5   :  { %v1567_v10 = vpop.eup %1566  ;;  %v1282_v11 = vpack.c.bf16 %v1565_v6, %v1563_v5  ;;  %v818_v12 = vadd.f32 %v1441_v9, %v1872_v7 }
 0x1d6   :  { %v1569_v13 = vpop.eup %1568  ;;  %v809_v14 = vpop.f32.mrf.mxu1 }
 0x1d7   :  { %1330 = vst [vmem:[#allocation3 + $0x38] sm:$0xff] %v1282_v11   ;;  %v1277_v15 = vpack.c.bf16 %v1569_v13, %v1567_v10  ;;  %1580 = vtanh.f32 %v818_v12  ;;  %v810_v16 = vadd.f32 %v1872_v7, %v809_v14 }
 0x1d8   :  { %1582 = vtanh.f32 %v807_v8  ;;  %v1444_v17 = vpop.f32.mrf.mxu1  ;;  %v1571_v20 = vpop.eup %1570 }
 0x1d9   :  { %1329 = vst [vmem:[#allocation3 + $0x30] sm:$0xff] %v1277_v15   ;;  %1584 = vtanh.f32 %v810_v16  ;;  %v831_v18 = vadd.f32 %v1444_v17, %v1872_v7 }
 0x1da   :  { %v822_v19 = vpop.f32.mrf.mxu1 }
 0x1db   :  { %v823_v22 = vadd.f32 %v1872_v7, %v822_v19  ;;  %1586 = vtanh.f32 %v831_v18 }
 0x1dc   :  { %v1573_v21 = vpop.eup %1572  ;;  %v1445_v23 = vpop.f32.mrf.mxu1 }
 0x1dd   :  { %v1575_v24 = vpop.eup %1574  ;;  %v1292_v25 = vpack.c.bf16 %v1573_v21, %v1571_v20  ;;  %v834_v26 = vadd.f32 %v1445_v23, %v1872_v7 }
 0x1de   :  { %v1577_v27 = vpop.eup %1576  ;;  %v825_v28 = vpop.f32.mrf.mxu1 }
 0x1df   :  { %1332 = vst [vmem:[#allocation3 + $0x48] sm:$0xff] %v1292_v25   ;;  %v1287_v29 = vpack.c.bf16 %v1577_v27, %v1575_v24  ;;  %1588 = vtanh.f32 %v834_v26  ;;  %v826_v30 = vadd.f32 %v1872_v7, %v825_v28 }
 0x1e0   :  { %1590 = vtanh.f32 %v823_v22  ;;  %v1448_v31 = vpop.f32.mrf.mxu1  ;;  %v1579_v34 = vpop.eup %1578 }
 0x1e1   :  { %1331 = vst [vmem:[#allocation3 + $0x40] sm:$0xff] %v1287_v29   ;;  %1592 = vtanh.f32 %v826_v30  ;;  %v847_v32 = vadd.f32 %v1448_v31, %v1872_v7 }
 0x1e2   :  { %v838_v33 = vpop.f32.mrf.mxu1 }
 0x1e3   :  { %v839_v36 = vadd.f32 %v1872_v7, %v838_v33  ;;  %1594 = vtanh.f32 %v847_v32 }
 0x1e4   :  { %v1581_v35 = vpop.eup %1580  ;;  %v1449_v37 = vpop.f32.mrf.mxu1 }
 0x1e5   :  { %v1583_v38 = vpop.eup %1582  ;;  %v1302_v39 = vpack.c.bf16 %v1581_v35, %v1579_v34  ;;  %v850_v40 = vadd.f32 %v1449_v37, %v1872_v7 }
 0x1e6   :  { %v1585_v41 = vpop.eup %1584  ;;  %v841_v42 = vpop.f32.mrf.mxu1 }
 0x1e7   :  { %1334 = vst [vmem:[#allocation3 + $0x58] sm:$0xff] %v1302_v39   ;;  %v1297_v43 = vpack.c.bf16 %v1585_v41, %v1583_v38  ;;  %1596 = vtanh.f32 %v850_v40  ;;  %v842_v44 = vadd.f32 %v1872_v7, %v841_v42 }
 0x1e8   :  { %1598 = vtanh.f32 %v839_v36  ;;  %v1587_v45 = vpop.eup %1586 }
 0x1e9   :  { %1333 = vst [vmem:[#allocation3 + $0x50] sm:$0xff] %v1297_v43   ;;  %1600 = vtanh.f32 %v842_v44 }
 0x1ec   :  { %v1589_v46 = vpop.eup %1588 }
 0x1ed   :  { %v1591_v47 = vpop.eup %1590  ;;  %v1312_v48 = vpack.c.bf16 %v1589_v46, %v1587_v45 }
 0x1ee   :  { %v1593_v49 = vpop.eup %1592 }
 0x1ef   :  { %1336 = vst [vmem:[#allocation3 + $0x68] sm:$0xff] %v1312_v48   ;;  %v1307_v50 = vpack.c.bf16 %v1593_v49, %v1591_v47 }
 0x1f0   :  { %v1595_v51 = vpop.eup %1594 }
 0x1f1   :  { %1335 = vst [vmem:[#allocation3 + $0x60] sm:$0xff] %v1307_v50  }
 0x1f4   :  { %v1597_v52 = vpop.eup %1596 }
 0x1f5   :  { %v1599_v54 = vpop.eup %1598  ;;  %v1322_v55 = vpack.c.bf16 %v1597_v52, %v1595_v51 }
 0x1f6   :  { %v1601_v53 = vpop.eup %1600 }
 0x1f7   :  { %1338 = vst [vmem:[#allocation3 + $0x78] sm:$0xff] %v1322_v55   ;;  %v1317_v7 = vpack.c.bf16 %v1601_v53, %v1599_v54 }
 0x1f9   :  { %1337 = vst [vmem:[#allocation3 + $0x70] sm:$0xff] %v1317_v7  }
 0x1fa   :  { %1613 = shalt.err (!%p1610_p4)
}
 0x1fb   :  { %s1625_s17 = smov 64   ;;  %s1626_s18 = smov 4  }
 0x1fc   :  { %1056 = dma.vmem_to_hbm [thread:$0]  %s1051_s15, 2048, %s1914_s5, [#allocation4], %s1625_s17, %s1625_s17, %s1626_s18  }
 0x1fd   :  { %1622 = dma.done.wait [#allocation4], 2048  }
 0x1fe   :  { %1623 = vsyncadd [#allocation4], 4294965248 }
 0x1ff   :  { %1060 = vsyncpa [#allocation4], 1 }

</bundles_post_ra>
